<compile_context>
chip_gen: v6e
topology: v6e:2x2x1
jax: 0.10.0
libtpu: 0.0.40
codegen_flags: <defaults>
</compile_context>

<pallas_src>
import jax
import jax.numpy as jnp
from jax.experimental import pallas as pl
from jax.experimental.pallas import tpu as pltpu


LANE = 1024                      # lane-dense block width (multiple of 128)
_BLOCK_BYTES = 2 * 1024 * 1024   # ~2 MiB/block; x2 (in+out) x2 (double-buffer)
                                 # = 8 MiB VMEM -> safe on v5e/v6e/v7x defaults


def _swish_kernel(x_ref, o_ref):
    """o = x * sigmoid(x), exact and numerically stable, native dtype."""
    x = x_ref[...]
    if not jnp.issubdtype(x.dtype, jnp.floating):
        x = x.astype(jnp.float32)
    pos = x >= 0
    # exp argument is always <= 0: never overflows (stable for very negative x).
    ex = jnp.exp(jnp.where(pos, -x, x))                     # EUP
    sig = jnp.where(pos, 1.0 / (1.0 + ex), ex / (1.0 + ex))  # exact (no approx vrcp)
    o_ref[...] = (x * sig).astype(o_ref.dtype)


def _pick_tile_rows(rows: int, itemsize: int) -> int:
    """Rows per block: multiple of 8 (sublane), ~2 MiB, >=4 grid steps if possible."""
    max_rows = max(8, _BLOCK_BYTES // (LANE * itemsize))  # 512 f32, 1024 bf16
    if rows <= 8:
        return rows                                        # single block, full extent
    quarter = -(-rows // 4)                                 # cdiv(rows, 4)
    quarter = -(-quarter // 8) * 8                          # round up to multiple of 8
    return int(min(max_rows, quarter))


def _swish_2d(x2: jax.Array) -> jax.Array:
    """Pallas call over a lane-dense (rows, LANE) view."""
    rows, lane = x2.shape
    tile_r = _pick_tile_rows(rows, x2.dtype.itemsize)
    grid = (pl.cdiv(rows, tile_r),)   # partial last block (rows % tile_r) is masked
    return pl.pallas_call(
        _swish_kernel,
        out_shape=jax.ShapeDtypeStruct((rows, lane), x2.dtype),
        grid_spec=pltpu.PrefetchScalarGridSpec(
            num_scalar_prefetch=0,
            grid=grid,
            # NOTE: pipeline_mode=pl.Buffered(3) is a possible extra ~% on pure
            # streaming; keep depth-2 default (measured-only change).
            in_specs=[pl.BlockSpec((tile_r, lane), lambda i: (i, 0))],
            out_specs=pl.BlockSpec((tile_r, lane), lambda i: (i, 0)),
        ),
        compiler_params=pltpu.CompilerParams(
            dimension_semantics=("parallel",),
        ),
    )(x2)


def _swish_jnp(x: jax.Array) -> jax.Array:
    """Plain-jnp SiLU for the tiny (<1024-element) remainder / fallback."""
    return x * jax.nn.sigmoid(x)


@jax.jit
def swish_pallas(x: jax.Array) -> jax.Array:
    """Elementwise Swish/SiLU via a Pallas TPU kernel. Matches x * sigmoid(x)."""
    orig_shape = x.shape
    n = x.size
    if n == 0:
        return x

    flat = x.reshape(-1)                 # contiguous view: free under XLA
    n_bulk = (n // LANE) * LANE

    if n_bulk == 0:
        # Smaller than one lane row: not worth a kernel launch.
        return _swish_jnp(x)

    if n_bulk == n:
        # Aligned: whole array streams through the kernel, zero extra copies.
        return _swish_2d(flat.reshape(n // LANE, LANE)).reshape(orig_shape)

    # Unaligned: kernel on the aligned bulk, plain jnp on the < LANE tail.
    # No full-array pad or [:n] slice-back is ever materialized.
    bulk = _swish_2d(flat[:n_bulk].reshape(n_bulk // LANE, LANE)).reshape(-1)
    tail = _swish_jnp(flat[n_bulk:])
    return jnp.concatenate([bulk, tail]).reshape(orig_shape)


if __name__ == "__main__":
    key = jax.random.PRNGKey(0)
    x = jax.random.normal(key, (2, 4, 16, 16), dtype=jnp.float32)

    y = swish_pallas(x)
    jax.block_until_ready(y)

    # Reference: SwishJit.forward == x * sigmoid(x) (SiLU).
    y_ref = x * jax.nn.sigmoid(x)
    assert y.shape == x.shape and y.dtype == x.dtype
    assert jnp.allclose(y, y_ref, atol=1e-5, rtol=1e-5)

    # Unaligned numel (not a multiple of 1024): exercises bulk-kernel + jnp tail.
    x2 = jax.random.normal(jax.random.PRNGKey(0), (3, 5, 7, 11), dtype=jnp.float32)
    y2 = swish_pallas(x2)
    jax.block_until_ready(y2)
    assert y2.shape == x2.shape and y2.dtype == x2.dtype
    assert jnp.allclose(y2, x2 * jax.nn.sigmoid(x2), atol=1e-5, rtol=1e-5)

    print("KERNEL_OK")
</pallas_src>

<mosaic_0001>
module attributes {stable_mosaic.version = 11 : i64} {
  func.func @_swish_kernel(%arg0: i32, %arg1: memref<2x1024xf32, #tpu.memory_space<vmem>>, %arg2: memref<2x1024xf32, #tpu.memory_space<vmem>>) attributes {dimension_semantics = [#tpu.dimension_semantics<parallel>], iteration_bounds = array<i64: 1>, scalar_prefetch = 0 : i64, scratch_operands = 0 : i64, tpu.core_type = #tpu.core_type<tc>, window_params = [{transform_indices = @transform_0, window_bounds = array<i64: 2, 1024>}, {transform_indices = @transform_1, window_bounds = array<i64: 2, 1024>}]} {
    %c0 = arith.constant 0 : index
    %c0_0 = arith.constant 0 : index
    %0 = vector.load %arg1[%c0, %c0_0] : memref<2x1024xf32, #tpu.memory_space<vmem>>, vector<2x1024xf32>
    %cst = arith.constant 0.000000e+00 : f32
    %1 = vector.broadcast %cst : f32 to vector<2x1024xf32>
    %2 = arith.cmpf oge, %0, %1 : vector<2x1024xf32>
    %cst_1 = arith.constant 0.000000e+00 : f32
    %3 = vector.broadcast %cst_1 : f32 to vector<2x1024xf32>
    %4 = arith.subf %3, %0 : vector<2x1024xf32>
    %5 = arith.select %2, %4, %0 : vector<2x1024xi1>, vector<2x1024xf32>
    %6 = math.exp %5 : vector<2x1024xf32>
    %cst_2 = arith.constant 1.000000e+00 : f32
    %7 = vector.broadcast %cst_2 : f32 to vector<2x1024xf32>
    %8 = arith.addf %7, %6 : vector<2x1024xf32>
    %cst_3 = arith.constant 1.000000e+00 : f32
    %9 = vector.broadcast %cst_3 : f32 to vector<2x1024xf32>
    %10 = arith.divf %9, %8 : vector<2x1024xf32>
    %cst_4 = arith.constant 1.000000e+00 : f32
    %11 = vector.broadcast %cst_4 : f32 to vector<2x1024xf32>
    %12 = arith.addf %11, %6 : vector<2x1024xf32>
    %13 = arith.divf %6, %12 : vector<2x1024xf32>
    %14 = arith.select %2, %10, %13 : vector<2x1024xi1>, vector<2x1024xf32>
    %15 = arith.mulf %0, %14 : vector<2x1024xf32>
    %c0_5 = arith.constant 0 : index
    %c0_6 = arith.constant 0 : index
    %16 = vector.load %arg2[%c0_5, %c0_6] : memref<2x1024xf32, #tpu.memory_space<vmem>>, vector<2x1024xf32>
    tpu.vector_store %arg2[%c0_5, %c0_6], %15 {strides = array<i32>} : memref<2x1024xf32, #tpu.memory_space<vmem>>, vector<2x1024xf32>,
    return
  }
  func.func @transform_0(%arg0: i32) -> (i32, i32) {
    %c0_i32 = arith.constant 0 : i32
    %c0_i32_0 = arith.constant 0 : i32
    return %arg0, %c0_i32 : i32, i32
  }
  func.func @transform_1(%arg0: i32) -> (i32, i32) {
    %c0_i32 = arith.constant 0 : i32
    %c0_i32_0 = arith.constant 0 : i32
    return %arg0, %c0_i32 : i32, i32
  }
}

</mosaic_0001>

<bundles_post_ra>
// kernel: swish_pallas.1
= control target key start
LH: loop header
LB: loop body
LE: loop exit
PB: predicated region body
PF: predicated region fallthrough
CT: control target
= control target key end

     0   :  { %s72_s0 = inlined_call_operand.vmem [shape: f32[2,1024], index: 0, kind: input, shape index: {}]   ;;  %s73_s1 = inlined_call_operand.vmem [shape: f32[2,1024], index: 1, kind: output, shape index: {}]  }
   0x1   :  { %v8_v0 = vld [vmem:[%s72_s0] sm:$0xff]  ;;  %v9_v1 = vld [vmem:[%s72_s0 + $0x8] sm:$0xff] }
   0x2   :  { %vm10_vm0 = vcmp.ge.f32.partialorder %v8_v0, 0.0  ;;  %v12_v2 = vsub.f32 0.0, %v8_v0  ;;  %vm11_vm1 = vcmp.ge.f32.partialorder %v9_v1, 0.0  ;;  %v13_v3 = vsub.f32 0.0, %v9_v1 }
   0x4   :  { %v14_v4 = vsel %vm10_vm0, %v12_v2, %v8_v0  ;;  %v15_v5 = vsel %vm11_vm1, %v13_v3, %v9_v1 }
   0x5   :  { %v16_v6 = vmul.f32 1.442695, %v14_v4  ;;  %v18_v7 = vmul.f32 1.442695, %v15_v5 }
   0x7   :  { %38 = vpow2.f32 %v16_v6 }
   0x8   :  { %40 = vpow2.f32 %v18_v7 }
  0x14   :  { %v39_v8 = vpop.eup %38 }
  0x15   :  { %v41_v9 = vpop.eup %40  ;;  %v20_v10 = vadd.f32 1.0, %v39_v8 }
  0x16   :  { %v21_v11 = vadd.f32 1.0, %v41_v9 }
  0x17   :  { %42 = vrcp.f32 %v20_v10 }
  0x18   :  { %44 = vrcp.f32 %v21_v11 }
  0x24   :  { %v43_v12 = vpop.eup %42 }
  0x25   :  { %v45_v13 = vpop.eup %44  ;;  %v26_v14 = vmul.f32 %v43_v12, %v39_v8 }
  0x26   :  { %v27_v15 = vmul.f32 %v45_v13, %v41_v9 }
  0x27   :  { %v28_v16 = vsel %vm10_vm0, %v43_v12, %v26_v14 }
  0x28   :  { %v30_v17 = vmul.f32 %v28_v16, %v8_v0  ;;  %v29_v18 = vsel %vm11_vm1, %v45_v13, %v27_v15 }
  0x29   :  { %v31_v19 = vmul.f32 %v29_v18, %v9_v1 }
  0x2a   :  { %32 = vst [vmem:[%s73_s1] sm:$0xff] %v30_v17 }
  0x2b   :  { %33 = vst [vmem:[%s73_s1 + $0x8] sm:$0xff] %v31_v19 }

</bundles_post_ra>
